<compile_context>
chip_gen: v5e
topology: v5e:2x2
jax: 0.10.0
libtpu: 0.0.40
codegen_flags: <defaults>
</compile_context>

<pallas_src>
import functools

import jax
import jax.numpy as jnp
from jax.experimental import pallas as pl
from jax.experimental.pallas import tpu as pltpu


def _round_up(x, m):
    return ((x + m - 1) // m) * m


def _sublane_multiple(dtype):
    # Sub-32-bit dtypes pack along sublanes: f32 -> 8, bf16 -> 16, int8/fp8 -> 32.
    return {4: 8, 2: 16, 1: 32}.get(jnp.dtype(dtype).itemsize, 8)


def _vmem_cap_bytes():
    """Usable VMEM budget: physical capacity minus headroom for Mosaic scratch."""
    cap = 64 << 20  # conservative default (v7x has 64 MiB per TensorCore)
    try:
        info = pltpu.get_tpu_info()
        cap = int(getattr(info, "vmem_capacity_bytes", cap))
    except Exception:
        pass
    return max(32 << 20, (cap * 7) // 8)


# ----------------------------------------------------------------------------
# Fused PreNorm(LayerNorm) + Linear kernel
#   out = normalize(x) @ W' + b'     (affine already folded into W', b')
# ----------------------------------------------------------------------------
def _prenorm_linear_kernel(x_ref, w_ref, b_ref, o_ref, y_ref, *, eps, inv_d):
    # Normalize the (tm, D) row tile ONCE (first j step) and cache it in VMEM.
    @pl.when(pl.program_id(1) == 0)
    def _():
        x = x_ref[...].astype(jnp.float32)
        mean = jnp.sum(x, axis=-1, keepdims=True) * inv_d
        xc = x - mean
        var = jnp.sum(xc * xc, axis=-1, keepdims=True) * inv_d
        inv = jax.lax.rsqrt(var + eps)
        y_ref[...] = (xc * inv).astype(y_ref.dtype)

    # MXU matmul on the cached normalized tile, f32 accumulation.
    acc = jnp.dot(y_ref[...], w_ref[...], preferred_element_type=jnp.float32)
    o_ref[...] = (acc + b_ref[...].astype(jnp.float32)).astype(o_ref.dtype)


def prenorm_linear_pallas(x, w, bias, eps=1e-5):
    """Fused: LayerNorm-normalize(x) @ w + bias.  w has shape (D_in, D_out)."""
    orig_shape = x.shape
    D_in, D_out = w.shape
    assert orig_shape[-1] == D_in
    x2 = x.reshape(-1, D_in)
    N = x2.shape[0]

    x_it = jnp.dtype(x.dtype).itemsize
    w_it = jnp.dtype(w.dtype).itemsize
    y_dtype = w.dtype                      # matmul-operand dtype (bf16 stays bf16)
    y_it = jnp.dtype(y_dtype).itemsize
    sub = _sublane_multiple(x.dtype)
    cap = _vmem_cap_bytes()

    # ---- output-column tile: make W resident (j collapses) when it fits ----
    w_budget = cap // 4
    if D_out % 128 != 0:
        tn = D_out                                     # full-dim block (odd dims)
    elif D_in * D_out * w_it <= w_budget:
        tn = D_out                                     # whole weight resident
    else:
        tn = 128
        for cand in (512, 256):
            if D_out % cand == 0 and 2 * D_in * cand * w_it <= w_budget:
                tn = cand
                break

    # ---- row tile: bounded by the f32 LN footprint + scratch ---------------
    per_row = D_in * (2 * x_it + y_it + 8)             # 2-buf x + y scratch + f32 temps
    tm = max(sub, min(512, (((cap // 4) // max(1, per_row)) // sub) * sub))
    if N <= tm:
        tm = _round_up(N, sub)

    grid = (pl.cdiv(N, tm), pl.cdiv(D_out, tn))

    need = (2 * tm * D_in * x_it        # x tile (double-buffered)
            + 2 * D_in * tn * w_it      # W tile
            + 2 * tn * 4                # bias
            + 2 * tm * tn * x_it        # output tile
            + tm * D_in * y_it          # normalized-y scratch
            + 2 * tm * D_in * 4         # f32 LN temporaries
            + tm * tn * 4               # f32 accumulator
            + (4 << 20))                # headroom
    vmem_limit = int(min(max(need, 16 << 20), cap))

    out = pl.pallas_call(
        functools.partial(_prenorm_linear_kernel, eps=eps, inv_d=1.0 / D_in),
        out_shape=jax.ShapeDtypeStruct((N, D_out), x.dtype),
        grid_spec=pltpu.PrefetchScalarGridSpec(
            num_scalar_prefetch=0,
            grid=grid,
            in_specs=[
                pl.BlockSpec((tm, D_in), lambda i, j: (i, 0)),   # x rows (resident over j)
                pl.BlockSpec((D_in, tn), lambda i, j: (0, j)),   # folded W cols
                pl.BlockSpec((1, tn), lambda i, j: (0, j)),      # folded bias
            ],
            out_specs=pl.BlockSpec((tm, tn), lambda i, j: (i, j)),
            scratch_shapes=[pltpu.VMEM((tm, D_in), y_dtype)],    # cached normalized tile
        ),
        compiler_params=pltpu.CompilerParams(
            dimension_semantics=("parallel", "arbitrary"),
            vmem_limit_bytes=vmem_limit),
    )(x2, w, bias.reshape(1, D_out))

    return out.reshape(orig_shape[:-1] + (D_out,))


# ----------------------------------------------------------------------------
# Standalone LayerNorm kernel (general PreNorm path: arbitrary fn)
# ----------------------------------------------------------------------------
def _layernorm_kernel(x_ref, g_ref, b_ref, o_ref, *, eps, inv_d):
    x = x_ref[...].astype(jnp.float32)                    # (tr, D)
    mean = jnp.sum(x, axis=-1, keepdims=True) * inv_d
    xc = x - mean
    var = jnp.sum(xc * xc, axis=-1, keepdims=True) * inv_d
    inv = jax.lax.rsqrt(var + eps)
    y = xc * inv * g_ref[...].astype(jnp.float32) + b_ref[...].astype(jnp.float32)
    o_ref[...] = y.astype(o_ref.dtype)


def layernorm_pallas(x, gamma, beta, eps=1e-5):
    """LayerNorm over the last axis of x (any leading shape), torch semantics."""
    orig_shape = x.shape
    D = orig_shape[-1]
    x2 = x.reshape(-1, D)
    N = x2.shape[0]

    x_it = jnp.dtype(x.dtype).itemsize
    sub = _sublane_multiple(x.dtype)
    cap = _vmem_cap_bytes()

    # Adaptive row tile: 2 input + 2 output buffers plus the f32 temporaries
    # must stay inside the VMEM budget even for large D on v7x (64 MiB).
    per_row = D * (4 * x_it + 2 * 4)
    tr = max(sub, min(1024, (((cap // 3) // max(1, per_row)) // sub) * sub))
    if N <= tr:
        tr = _round_up(N, sub)

    need = 4 * tr * D * x_it + 2 * tr * D * 4 + 8 * D * 4 + (2 << 20)
    vmem_limit = int(min(max(need, 16 << 20), cap))

    out = pl.pallas_call(
        functools.partial(_layernorm_kernel, eps=eps, inv_d=1.0 / D),
        out_shape=jax.ShapeDtypeStruct((N, D), x.dtype),
        grid_spec=pltpu.PrefetchScalarGridSpec(
            num_scalar_prefetch=0,
            grid=(pl.cdiv(N, tr),),           # ragged last block: writes masked
            in_specs=[
                pl.BlockSpec((tr, D), lambda i: (i, 0)),
                pl.BlockSpec((1, D), lambda i: (0, 0)),
                pl.BlockSpec((1, D), lambda i: (0, 0)),
            ],
            out_specs=pl.BlockSpec((tr, D), lambda i: (i, 0)),
        ),
        compiler_params=pltpu.CompilerParams(
            dimension_semantics=("parallel",),
            vmem_limit_bytes=vmem_limit),
    )(x2, gamma.reshape(1, D), beta.reshape(1, D))
    return out.reshape(orig_shape)


# ----------------------------------------------------------------------------
# PreNorm wrappers
# ----------------------------------------------------------------------------
class PreNormPallas:
    """General PreNorm: x -> fn(LayerNorm(x), **kwargs), arbitrary fn."""
    # TODO(synk): an arbitrary `fn` cannot be fused into the LN kernel; only
    # the common Linear case is fused (PreNormLinearPallas below).

    def __init__(self, dim, fn, dtype=jnp.float32, eps=1e-5):
        self.dim = dim
        self.fn = fn
        self.eps = eps
        # nn.LayerNorm(dim) default init: weight = ones, bias = zeros.
        self.gamma = jnp.ones((dim,), dtype=dtype)
        self.beta = jnp.zeros((dim,), dtype=dtype)

    def __call__(self, x, **kwargs):
        x = layernorm_pallas(x, self.gamma, self.beta, eps=self.eps)
        return self.fn(x, **kwargs)


class PreNormLinearPallas:
    """PreNorm(dim, nn.Linear(dim, d_out)) fused into one Pallas kernel.

    The LN affine is folded into the linear once at init:
        LN(x) @ W^T + b = ((x - mu) * rsqrt(var+eps)) @ (gamma[:,None] * W^T)
                          + (beta @ W^T + b)
    """

    def __init__(self, dim, d_out, weight, bias, eps=1e-5,
                 ln_weight=None, ln_bias=None, matmul_dtype=None):
        self.eps = eps
        w_t = jnp.asarray(weight).T                      # torch (out,in) -> (in,out)
        gamma = (jnp.ones((dim,), w_t.dtype) if ln_weight is None
                 else jnp.asarray(ln_weight, w_t.dtype))
        beta = (jnp.zeros((dim,), w_t.dtype) if ln_bias is None
                else jnp.asarray(ln_bias, w_t.dtype))
        b = jnp.asarray(bias, w_t.dtype)
        w_f = gamma[:, None] * w_t                       # (dim, d_out)
        b_f = beta @ w_t + b                             # (d_out,)
        if matmul_dtype is not None:
            # Optional bf16 matmul operands (full MXU rate, half W DMA);
            # f32 accumulation is kept in the kernel.  Off by default.
            w_f = w_f.astype(matmul_dtype)
        self.w = w_f
        self.b = b_f

    def __call__(self, x):
        return prenorm_linear_pallas(x, self.w, self.b, eps=self.eps)


if __name__ == "__main__":
    key = jax.random.PRNGKey(0)
    kx, kw, kb, kr = jax.random.split(key, 4)

    batch, seq, dim = 2, 8, 32
    x = jax.random.normal(kx, (batch, seq, dim), dtype=jnp.float32)

    # Linear(dim, dim) parameters in torch layout (out, in).
    w = jax.random.normal(kw, (dim, dim), dtype=jnp.float32) * 0.05
    b = jax.random.normal(kb, (dim,), dtype=jnp.float32) * 0.01

    def ln_ref(t, eps=1e-5):
        mean = jnp.mean(t, axis=-1, keepdims=True)
        var = jnp.mean((t - mean) ** 2, axis=-1, keepdims=True)
        return (t - mean) / jnp.sqrt(var + eps)

    # --- fused PreNorm + Linear path -----------------------------------------
    block = PreNormLinearPallas(dim, dim, w, b)
    out = jax.block_until_ready(block(x))
    ref = ln_ref(x) @ w.T + b
    assert out.shape == (batch, seq, dim)
    assert jnp.max(jnp.abs(out - ref)) < 1e-4, "fused PreNorm+Linear mismatch"

    # --- ragged row count (N not a multiple of the row tile) -----------------
    xr = jax.random.normal(kr, (3, 7, dim), dtype=jnp.float32)
    out_r = jax.block_until_ready(block(xr))
    ref_r = ln_ref(xr) @ w.T + b
    assert jnp.max(jnp.abs(out_r - ref_r)) < 1e-4, "ragged fused PreNorm+Linear mismatch"

    # --- general PreNorm path with an arbitrary fn (standalone LN kernel) ----
    prenorm = PreNormPallas(dim, fn=lambda t: t * 2.0)
    out2 = jax.block_until_ready(prenorm(x))
    assert jnp.max(jnp.abs(out2 - ln_ref(x) * 2.0)) < 1e-4, "LayerNorm mismatch"

    print("KERNEL_OK")
</pallas_src>

<mosaic_0001>
module attributes {stable_mosaic.version = 11 : i64} {
  func.func @_prenorm_linear_kernel(%arg0: i32, %arg1: i32, %arg2: memref<16x32xf32, #tpu.memory_space<vmem>>, %arg3: memref<32x32xf32, #tpu.memory_space<vmem>>, %arg4: memref<1x32xf32, #tpu.memory_space<vmem>>, %arg5: memref<16x32xf32, #tpu.memory_space<vmem>>, %arg6: memref<16x32xf32, #tpu.memory_space<vmem>>) attributes {dimension_semantics = [#tpu.dimension_semantics<parallel>, #tpu.dimension_semantics<arbitrary>], iteration_bounds = array<i64: 1, 1>, scalar_prefetch = 0 : i64, scratch_operands = 1 : i64, tpu.core_type = #tpu.core_type<tc>, window_params = [{transform_indices = @transform_0, window_bounds = array<i64: 16, 32>}, {transform_indices = @transform_1, window_bounds = array<i64: 32, 32>}, {transform_indices = @transform_2, window_bounds = array<i64: 1, 32>}, {transform_indices = @transform_3, window_bounds = array<i64: 16, 32>}]} {
    %c0_i32 = arith.constant 0 : i32
    %0 = arith.cmpi eq, %arg1, %c0_i32 : i32
    %1 = arith.extui %0 : i1 to i32
    %c0_i32_0 = arith.constant 0 : i32
    %2 = arith.cmpi ne, %1, %c0_i32_0 : i32
    scf.if %2 {
      %c0_8 = arith.constant 0 : index
      %c0_9 = arith.constant 0 : index
      %10 = vector.load %arg2[%c0_8, %c0_9] : memref<16x32xf32, #tpu.memory_space<vmem>>, vector<16x32xf32>
      %cst_10 = arith.constant dense<0.000000e+00> : vector<16xf32>
      %11 = vector.multi_reduction <add>, %10, %cst_10 [1] : vector<16x32xf32> to vector<16xf32>
      %12 = vector.shape_cast %11 : vector<16xf32> to vector<16x1xf32>
      %cst_11 = arith.constant 3.125000e-02 : f32
      %13 = vector.broadcast %cst_11 : f32 to vector<16x1xf32>
      %14 = arith.mulf %12, %13 : vector<16x1xf32>
      %15 = vector.broadcast %14 : vector<16x1xf32> to vector<16x32xf32>
      %16 = arith.subf %10, %15 : vector<16x32xf32>
      %17 = arith.mulf %16, %16 : vector<16x32xf32>
      %cst_12 = arith.constant dense<0.000000e+00> : vector<16xf32>
      %18 = vector.multi_reduction <add>, %17, %cst_12 [1] : vector<16x32xf32> to vector<16xf32>
      %19 = vector.shape_cast %18 : vector<16xf32> to vector<16x1xf32>
      %cst_13 = arith.constant 3.125000e-02 : f32
      %20 = vector.broadcast %cst_13 : f32 to vector<16x1xf32>
      %21 = arith.mulf %19, %20 : vector<16x1xf32>
      %cst_14 = arith.constant 9.99999974E-6 : f32
      %22 = vector.broadcast %cst_14 : f32 to vector<16x1xf32>
      %23 = arith.addf %21, %22 : vector<16x1xf32>
      %24 = math.rsqrt %23 : vector<16x1xf32>
      %25 = vector.broadcast %24 : vector<16x1xf32> to vector<16x32xf32>
      %26 = arith.mulf %16, %25 : vector<16x32xf32>
      %c0_15 = arith.constant 0 : index
      %c0_16 = arith.constant 0 : index
      %27 = vector.load %arg6[%c0_15, %c0_16] : memref<16x32xf32, #tpu.memory_space<vmem>>, vector<16x32xf32>
      tpu.vector_store %arg6[%c0_15, %c0_16], %26 {strides = array<i32>} : memref<16x32xf32, #tpu.memory_space<vmem>>, vector<16x32xf32>,
    } else {
    }
    %c0 = arith.constant 0 : index
    %c0_1 = arith.constant 0 : index
    %3 = vector.load %arg6[%c0, %c0_1] : memref<16x32xf32, #tpu.memory_space<vmem>>, vector<16x32xf32>
    %c0_2 = arith.constant 0 : index
    %c0_3 = arith.constant 0 : index
    %4 = vector.load %arg3[%c0_2, %c0_3] : memref<32x32xf32, #tpu.memory_space<vmem>>, vector<32x32xf32>
    %cst = arith.constant dense<0.000000e+00> : vector<16x32xf32>
    %5 = tpu.matmul %3, %4, %cst {dimension_numbers = #tpu.dot_dimension_numbers<[1], [0], [0], [1], [0, 0, 1, 1], [], []>} : vector<16x32xf32>, vector<32x32xf32>, vector<16x32xf32> -> vector<16x32xf32>
    %c0_4 = arith.constant 0 : index
    %c0_5 = arith.constant 0 : index
    %6 = vector.load %arg4[%c0_4, %c0_5] : memref<1x32xf32, #tpu.memory_space<vmem>>, vector<1x32xf32>
    %7 = vector.broadcast %6 : vector<1x32xf32> to vector<16x32xf32>
    %8 = arith.addf %5, %7 : vector<16x32xf32>
    %c0_6 = arith.constant 0 : index
    %c0_7 = arith.constant 0 : index
    %9 = vector.load %arg5[%c0_6, %c0_7] : memref<16x32xf32, #tpu.memory_space<vmem>>, vector<16x32xf32>
    tpu.vector_store %arg5[%c0_6, %c0_7], %8 {strides = array<i32>} : memref<16x32xf32, #tpu.memory_space<vmem>>, vector<16x32xf32>,
    return
  }
  func.func @transform_0(%arg0: i32, %arg1: i32) -> (i32, i32) {
    %c0_i32 = arith.constant 0 : i32
    %c0_i32_0 = arith.constant 0 : i32
    return %arg0, %c0_i32 : i32, i32
  }
  func.func @transform_1(%arg0: i32, %arg1: i32) -> (i32, i32) {
    %c0_i32 = arith.constant 0 : i32
    %c0_i32_0 = arith.constant 0 : i32
    return %c0_i32, %arg1 : i32, i32
  }
  func.func @transform_2(%arg0: i32, %arg1: i32) -> (i32, i32) {
    %c0_i32 = arith.constant 0 : i32
    %c0_i32_0 = arith.constant 0 : i32
    return %c0_i32, %arg1 : i32, i32
  }
  func.func @transform_3(%arg0: i32, %arg1: i32) -> (i32, i32) {
    %c0_i32 = arith.constant 0 : i32
    return %arg0, %arg1 : i32, i32
  }
}

</mosaic_0001>

<bundles_post_ra>
// kernel: tpu_custom_call.1
= control target key start
LH: loop header
LB: loop body
LE: loop exit
PB: predicated region body
PF: predicated region fallthrough
CT: control target
= control target key end

     0   :  { %8 = vsyncpa [#allocation4], 0  ;;  %s312_s0 = inlined_call_operand.hbm [shape: f32[16,32], index: 0, kind: input, shape index: {}]   ;;  %s313_s1 = inlined_call_operand.hbm [shape: f32[32,32], index: 1, kind: input, shape index: {}]   ;;  %s314_s2 = inlined_call_operand.vmem [shape: f32[1,32], index: 2, kind: input, shape index: {}]   ;;  %s315_s3 = inlined_call_operand.hbm [shape: f32[16,32], index: 3, kind: output, shape index: {}]  }
   0x1   :  { %9 = vsyncpa [#allocation7], 0 }
   0x2   :  { %10 = vsyncpa [#allocation5], 0  ;;  %s15_s14 = sshll.u32 %s312_s0, 4  ;;  %s256_s15 = smov [#allocation3]   ;;  %s16_s14 = int_to_ptr.hbm [resolvable:$true] %s15_s14 }
   0x3   :  { %s17_s16 = sshll.u32 %s256_s15, 4  ;;  %s28_s19 = sshll.u32 %s313_s1, 4  ;;  %s18_s16 = int_to_ptr.vmem [resolvable:$true] %s17_s16  ;;  %s29_s19 = int_to_ptr.hbm [resolvable:$true] %s28_s19 }
   0x4   :  { %s257_s20 = smov 128   ;;  %s258_s21 = smov 8  }
   0x5   :  { %23 = dma.hbm_to_vmem [thread:$0]  %s16_s14, 256, %s18_s16, [#allocation4], %s257_s20, %s257_s20, %s258_s21  }
   0x6   :  { %s259_s22 = smov [#allocation6]  }
   0x7   :  { %s30_s23 = sshll.u32 %s259_s22, 4  ;;  %s31_s23 = int_to_ptr.vmem [resolvable:$true] %s30_s23 }
   0x8   :  { %36 = dma.hbm_to_vmem [thread:$0]  %s29_s19, 512, %s31_s23, [#allocation7], %s257_s20, %s257_s20, %s258_s21  }
   0x9   :  { %250 = dma.done.wait [#allocation4], 256  }
   0xa   :  { %251 = vsyncadd [#allocation4], 4294967040 }
   0xb   :  { %252 = dma.done.wait [#allocation7], 512  }
   0xc   :  { %253 = vsyncadd [#allocation7], 4294966784  ;;  %vm53_vm0 = vcmask 261120   ;;  %v51_v0 = vld [vmem:[#allocation3] sm:$0xff]  ;;  %v52_v2 = vld [vmem:[#allocation3 + $0x8] sm:$0xff]  ;;  %s260_s24 = smov [#allocation8]  }
   0xd   :  { %v54_v1 = vsel %vm53_vm0, %v51_v0, 0.0  ;;  %v57_v3 = vsel %vm53_vm0, %v52_v2, 0.0  ;;  %v105_v14 = vld [vmem:[#allocation6 + $0x18] sm:$0xff]  ;;  %v104_v15 = vld [vmem:[#allocation6 + $0x10] sm:$0xff]  ;;  %v103_v16 = vld [vmem:[#allocation6 + $0x8] sm:$0xff]  ;;  %s146_s25 = sshll.u32 %s260_s24, 4  ;;  %s147_s25 = int_to_ptr.vmem [resolvable:$true] %s146_s25 }
   0xe   :  { %55 = vadd.xlane.f32.xlu0 %v54_v1  ;;  %129 = vmatpush.msra.mxu0 %v105_v14  ;;  %v102_v17 = vld [vmem:[#allocation6] sm:$0xff]  ;;  %s148_s28 = sshll.u32 %s315_s3, 4  ;;  %s149_s28 = int_to_ptr.hbm [resolvable:$true] %s148_s28 }
   0xf   :  { %164 = vmatpush.msra.mxu1 %v105_v14  ;;  %v173_v42 = vld [vmem:[%s314_s2] ss:$0 sm:$0xff] }
  0x10   :  { %130 = vmatpush.msra.mxu0 %v104_v15 }
  0x11   :  { %165 = vmatpush.msra.mxu1 %v104_v15 }
  0x12   :  { %131 = vmatpush.msra.mxu0 %v103_v16 }
  0x13   :  { %166 = vmatpush.msra.mxu1 %v103_v16 }
  0x14   :  { %132 = vmatpush.msra.mxu0 %v102_v17 }
  0x15   :  { %167 = vmatpush.msra.mxu1 %v102_v17 }
  0x16   :  { %58 = vadd.xlane.f32.xlu0 %v57_v3 }
  0x81   :  { %v56_v4 = vpop.xlane.xlu0 %55 }
  0x82   :  { %v60_v5 = vmul.f32 0.03125, %v56_v4 }
  0x84   :  { %v62_v6 = vsub.f32 %v51_v0, %v60_v5 }
  0x86   :  { %v64_v7 = vmul.f32 %v62_v6, %v62_v6 }
  0x88   :  { %v66_v8 = vsel %vm53_vm0, %v64_v7, 0.0 }
  0x89   :  { %67 = vadd.xlane.f32.xlu1 %v66_v8  ;;  %v59_v9 = vpop.xlane.xlu0 %58 }
  0x8a   :  { %v61_v10 = vmul.f32 0.03125, %v59_v9 }
  0x8c   :  { %v63_v11 = vsub.f32 %v52_v2, %v61_v10 }
  0x8e   :  { %v65_v12 = vmul.f32 %v63_v11, %v63_v11 }
  0x90   :  { %v69_v13 = vsel %vm53_vm0, %v65_v12, 0.0 }
  0x91   :  { %70 = vadd.xlane.f32.xlu1 %v69_v13 }
  0xfc   :  { %v68_v18 = vpop.xlane.xlu1 %67 }
  0xfd   :  { %v72_v19 = vmul.f32 0.03125, %v68_v18 }
  0xff   :  { %v74_v20 = vadd.f32 1e-05, %v72_v19 }
 0x101   :  { %174 = vrsqrt.f32 %v74_v20  ;;  %vm82_vm2 = vweird.f32 %v74_v20 }
 0x104   :  { %v71_v21 = vpop.xlane.xlu1 %70 }
 0x105   :  { %v73_v22 = vmul.f32 0.03125, %v71_v21 }
 0x107   :  { %v175_v23 = vpop.eup %174  ;;  %v75_v24 = vadd.f32 1e-05, %v73_v22 }
 0x108   :  { %v77_v25 = vmul.f32 %v175_v23, %v74_v20  ;;  %vm83_vm1 = vweird.f32 %v175_v23 }
 0x109   :  { %176 = vrsqrt.f32 %v75_v24  ;;  %vm84_vm3 = vmor %vm82_vm2, %vm83_vm1  ;;  %vm92_vm5 = vweird.f32 %v75_v24 }
 0x10a   :  { %v78_v26 = vmul.f32 %v175_v23, %v77_v25 }
 0x10c   :  { %v79_v27 = vmul.f32 0.5, %v78_v26 }
 0x10e   :  { %v80_v28 = vsub.f32 1.5, %v79_v27 }
 0x10f   :  { %v177_v29 = vpop.eup %176 }
 0x110   :  { %v81_v30 = vmul.f32 %v175_v23, %v80_v28  ;;  %v87_v31 = vmul.f32 %v177_v29, %v75_v24  ;;  %vm93_vm4 = vweird.f32 %v177_v29 }
 0x111   :  { %vm94_vm6 = vmor %vm92_vm5, %vm93_vm4 }
 0x112   :  { %v85_v32 = vsel %vm84_vm3, %v175_v23, %v81_v30  ;;  %v88_v33 = vmul.f32 %v177_v29, %v87_v31 }
 0x113   :  { %v96_v34 = vmul.f32 %v85_v32, %v62_v6 }
 0x114   :  { %v89_v35 = vmul.f32 0.5, %v88_v33 }
 0x115   :  { %98 = vst.msk [vmem:[#allocation2] sm:$0xff] %vm53_vm0, %v96_v34 }
 0x116   :  { %v90_v36 = vsub.f32 1.5, %v89_v35 }
 0x118   :  { %v91_v37 = vmul.f32 %v177_v29, %v90_v36 }
 0x11a   :  { %v95_v38 = vsel %vm94_vm6, %v177_v29, %v91_v37 }
 0x11b   :  { %v97_v39 = vmul.f32 %v95_v38, %v63_v11 }
 0x11c   :  { %v100_v40 = vld [vmem:[#allocation2] sm:$0xff] }
 0x11d   :  { %99 = vst.msk [vmem:[#allocation2 + $0x8] sm:$0xff] %vm53_vm0, %v97_v39  ;;  %162 = vmatmul.msk.f32.vlgmr.msra.gmra.mxu0 %vm53_vm0, %v100_v40 }
 0x124   :  { %v101_v41 = vld [vmem:[#allocation2 + $0x8] sm:$0xff] }
 0x125   :  { %163 = vmatmul.msk.f32.vlgmr.msra.gmra.mxu1 %vm53_vm0, %v101_v41 }
 0x19a   :  { %v134_v43 = vpop.f32.mrf.mxu0 }
 0x19b   :  { %v135_v44 = vadd.f32 %v173_v42, %v134_v43 }
 0x19d   :  { %140 = vst.msk [vmem:[#allocation8] sm:$0xff] %vm53_vm0, %v135_v44 }
 0x1a2   :  { %v137_v45 = vpop.f32.mrf.mxu1 }
 0x1a3   :  { %v138_v46 = vadd.f32 %v173_v42, %v137_v45 }
 0x1a5   :  { %141 = vst.msk [vmem:[#allocation8 + $0x8] sm:$0xff] %vm53_vm0, %v138_v46 }
 0x1a6   :  { %154 = dma.vmem_to_hbm [thread:$0]  %s147_s25, 256, %s149_s28, [#allocation5], %s257_s20, %s257_s20, %s258_s21  }
 0x1a7   :  { %254 = dma.done.wait [#allocation5], 256  }
 0x1a8   :  { %255 = vsyncadd [#allocation5], 4294967040 }
 0x1a9   :  { %159 = vsyncpa [#allocation4], 1 }
 0x1aa   :  { %160 = vsyncpa [#allocation7], 1 }
 0x1ab   :  { %161 = vsyncpa [#allocation5], 1 }

</bundles_post_ra>
